<compile_context>
chip_gen: v6e
topology: v6e:2x2x1
jax: 0.10.0
libtpu: 0.0.40
codegen_flags: <defaults>
</compile_context>

<pallas_src>
import math

import jax
import jax.numpy as jnp
from jax import lax
from jax.experimental import pallas as pl
from jax.experimental.pallas import tpu as pltpu

BN_EPS = 1e-5
_INV_SQRT2 = 1.0 / math.sqrt(2.0)
N_LAYERS = 3


def _gelu_exact(x):
    # nn.GELU() default: 0.5 * x * (1 + erf(x / sqrt(2)))
    return 0.5 * x * (1.0 + lax.erf(x * _INV_SQRT2))


def _bn_gelu(h, gamma, beta):
    """Training-mode BatchNorm1d (biased variance, two-pass) + exact GELU."""
    mean = jnp.mean(h, axis=0, keepdims=True)
    centered = h - mean
    var = jnp.mean(centered * centered, axis=0, keepdims=True)
    hn = centered * (lax.rsqrt(var + BN_EPS) * gamma) + beta
    return _gelu_exact(hn)


# ----------------------------------------------------------------------------
# Fused path: single grid step, layers unrolled in-kernel (small / medium W).
# ----------------------------------------------------------------------------
def _fused_kernel(x_ref, vec_ref, w_ref, o_ref):
    """x_ref (N,W); vec_ref (3,3,W) [gamma,beta,bias]; w_ref (3,W,W) bf16 W.T."""
    x = x_ref[...].astype(jnp.float32)
    h = x
    for l in range(w_ref.shape[0]):  # static unroll over the 3 layers
        gamma = vec_ref[l, 0:1, :]
        beta = vec_ref[l, 1:2, :]
        lbias = vec_ref[l, 2:3, :]
        g = _bn_gelu(h, gamma, beta)
        h = jnp.dot(g.astype(w_ref.dtype), w_ref[l],
                    preferred_element_type=jnp.float32) + lbias
    o_ref[...] = (h + x).astype(o_ref.dtype)


# ----------------------------------------------------------------------------
# Tiled path: grid=(layers, K tiles of the contraction) for large W.
# ----------------------------------------------------------------------------
def _tiled_kernel(x_ref, vec_ref, w_ref, o_ref, h_ref, g_ref, acc_ref):
    """vec_ref (1,3,W); w_ref (1,tk,W) bf16; h/acc f32 and g bf16 scratches."""
    layer = pl.program_id(0)
    k = pl.program_id(1)
    nk = pl.num_programs(1)
    last_layer = pl.num_programs(0) - 1
    tk = w_ref.shape[1]

    @pl.when(jnp.logical_and(layer == 0, k == 0))
    def _():
        h_ref[...] = x_ref[...].astype(jnp.float32)

    @pl.when(k == 0)
    def _():
        g_ref[...] = _bn_gelu(
            h_ref[...], vec_ref[0, 0:1, :], vec_ref[0, 1:2, :]
        ).astype(g_ref.dtype)
        acc_ref[...] = jnp.zeros_like(acc_ref)

    start = pl.multiple_of(k * tk, tk)
    acc_ref[...] += jnp.dot(g_ref[:, pl.ds(start, tk)], w_ref[0],
                            preferred_element_type=jnp.float32)

    @pl.when(k == nk - 1)
    def _():
        h_ref[...] = acc_ref[...] + vec_ref[0, 2:3, :]

    @pl.when(jnp.logical_and(k == nk - 1, layer == last_layer))
    def _():
        o_ref[...] = (h_ref[...] + x_ref[...].astype(jnp.float32)).astype(o_ref.dtype)


# ----------------------------------------------------------------------------
# VMEM budgeting (generation-aware).
# ----------------------------------------------------------------------------
def _vmem_cap_bytes():
    try:
        cap = int(pltpu.get_tpu_info().vmem_capacity_bytes)
    except Exception:
        cap = 64 << 20  # conservative fallback == v7x per-core VMEM
    return int(0.85 * cap)  # ~54 MiB on v7x, ~109 MiB on v5e/v6e


def _vmem_limit_bytes(needed_bytes):
    return int(min(_vmem_cap_bytes(), max(needed_bytes + (2 << 20), 32 << 20)))


# ----------------------------------------------------------------------------
# Wrappers.
# ----------------------------------------------------------------------------
def _residual_block_fused(x, vec_params, w_stack):
    n, w = x.shape
    n_layers = w_stack.shape[0]
    needed = (
        2 * n_layers * w * w * 2      # (3,W,W) bf16 weight stack (2 buffers)
        + 2 * n_layers * 3 * w * 4    # (3,3,W) param slab
        + 4 * n * w * 4               # x + out
        + 4 * n * w * 4               # live f32 temporaries
    )
    return pl.pallas_call(
        _fused_kernel,
        out_shape=jax.ShapeDtypeStruct((n, w), x.dtype),
        grid=(1,),
        in_specs=[
            pl.BlockSpec((n, w), lambda i: (0, 0)),
            pl.BlockSpec((n_layers, 3, w), lambda i: (0, 0, 0)),
            pl.BlockSpec((n_layers, w, w), lambda i: (0, 0, 0)),
        ],
        out_specs=pl.BlockSpec((n, w), lambda i: (0, 0)),
        compiler_params=pltpu.CompilerParams(
            dimension_semantics=("arbitrary",),
            vmem_limit_bytes=_vmem_limit_bytes(needed),
        ),
    )(x, vec_params, w_stack)


def _residual_block_tiled(x, vec_params, w_stack, *, tk):
    n, w = x.shape
    n_layers = w_stack.shape[0]
    assert w % tk == 0 and tk % 128 == 0, "tiled path needs W % tk == 0, tk % 128 == 0"
    nk = w // tk
    needed = (
        2 * tk * w * 2                # weight tile double buffer (bf16)
        + 2 * 3 * w * 4               # per-layer vector slab
        + 4 * n * w * 4               # x + out
        + 2 * n * w * 4 + n * w * 2   # h + acc (f32), g (bf16) scratch
        + 2 * n * w * 4               # temporaries
    )
    return pl.pallas_call(
        _tiled_kernel,
        out_shape=jax.ShapeDtypeStruct((n, w), x.dtype),
        grid=(n_layers, nk),
        in_specs=[
            pl.BlockSpec((n, w), lambda l, k: (0, 0)),        # x (resident)
            pl.BlockSpec((1, 3, w), lambda l, k: (l, 0, 0)),  # per-layer vectors
            pl.BlockSpec((1, tk, w), lambda l, k: (l, k, 0)),  # weight K-tile
        ],
        out_specs=pl.BlockSpec((n, w), lambda l, k: (0, 0)),
        scratch_shapes=[
            pltpu.VMEM((n, w), jnp.float32),    # h carried across layers
            pltpu.VMEM((n, w), w_stack.dtype),  # BN->GELU activation (bf16)
            pltpu.VMEM((n, w), jnp.float32),    # matmul accumulator
        ],
        compiler_params=pltpu.CompilerParams(
            dimension_semantics=("arbitrary", "arbitrary"),
            vmem_limit_bytes=_vmem_limit_bytes(needed),
        ),
    )(x, vec_params, w_stack)


def residual_block(x, vec_params, w_stack, *, force_tiled=False, tk=512):
    """x: (N, W) f32; vec_params: (3, 3, W) f32; w_stack: (3, W, W) bf16 (W.T)."""
    n, w = x.shape
    if (not force_tiled) and w <= 1024:
        # Whole bf16 weight stack <= 6 MiB: single grid step, no per-layer
        # step overhead or exposed layer-0 weight-DMA prologue.
        return _residual_block_fused(x, vec_params, w_stack)
    # Large W: bound peak weight VMEM to 2*tk*W*2 bytes via K-tiling.
    tk = min(tk, w)
    while w % tk != 0 and tk > 128:
        tk //= 2
    tk = max(tk, 128)
    return _residual_block_tiled(x, vec_params, w_stack, tk=tk)


# ----------------------------------------------------------------------------
# Parameter init (mirrors the PyTorch module __init__) and pure-JAX reference.
# ----------------------------------------------------------------------------
def make_params(width, key, n_layers=N_LAYERS):
    # kaiming_uniform_(a=0): bound = sqrt(6 / fan_in)
    bound = math.sqrt(6.0 / width)
    w = jax.random.uniform(key, (n_layers, width, width), jnp.float32,
                           minval=-bound, maxval=bound)  # torch layout (out, in)
    w_t = jnp.transpose(w, (0, 2, 1)).astype(jnp.bfloat16)  # (in, out) for x @ W.T

    vec_params = jnp.stack(
        [
            jnp.ones((n_layers, width), jnp.float32),        # BN gamma
            jnp.zeros((n_layers, width), jnp.float32),       # BN beta
            jnp.full((n_layers, width), 0.01, jnp.float32),  # Linear bias
        ],
        axis=1,
    )  # (n_layers, 3, W)
    return vec_params, w_t


def residual_block_ref(x, vec_params, w_stack):
    """Pure-JAX reference mirroring the kernel's precision choices."""
    h = x.astype(jnp.float32)
    for l in range(w_stack.shape[0]):
        gamma, beta, lbias = vec_params[l, 0], vec_params[l, 1], vec_params[l, 2]
        mean = jnp.mean(h, axis=0, keepdims=True)
        var = jnp.mean((h - mean) ** 2, axis=0, keepdims=True)
        hn = (h - mean) * lax.rsqrt(var + BN_EPS) * gamma + beta
        g = _gelu_exact(hn)
        h = jnp.dot(g.astype(jnp.bfloat16), w_stack[l],
                    preferred_element_type=jnp.float32) + lbias
    return (h + x.astype(jnp.float32)).astype(x.dtype)


if __name__ == "__main__":
    key = jax.random.PRNGKey(0)

    # --- fused single-step path (demo size: N=16, W=128) --------------------
    key, xkey, pkey = jax.random.split(key, 3)
    batch, width = 16, 128  # lane-dense (W % 128 == 0), sublane-aligned (N % 8 == 0)
    x = jax.random.normal(xkey, (batch, width), jnp.float32)
    vec_params, w_stack = make_params(width, pkey)

    out = jax.block_until_ready(residual_block(x, vec_params, w_stack))
    ref = residual_block_ref(x, vec_params, w_stack)
    assert out.shape == (batch, width)
    assert jnp.allclose(out, ref, atol=5e-3, rtol=5e-3), "fused path mismatch"

    # --- K-tiled large-W path, exercised at a small shape (W=256, tk=128) ---
    key, xkey2, pkey2 = jax.random.split(key, 3)
    batch2, width2 = 16, 256
    x2 = jax.random.normal(xkey2, (batch2, width2), jnp.float32)
    vec_params2, w_stack2 = make_params(width2, pkey2)

    out2 = jax.block_until_ready(
        residual_block(x2, vec_params2, w_stack2, force_tiled=True, tk=128))
    ref2 = residual_block_ref(x2, vec_params2, w_stack2)
    assert jnp.allclose(out2, ref2, atol=5e-3, rtol=5e-3), "tiled path mismatch"

    print("KERNEL_OK")
</pallas_src>

<mosaic_0001>
module attributes {stable_mosaic.version = 11 : i64} {
  func.func @_fused_kernel(%arg0: i32, %arg1: memref<16x128xf32, #tpu.memory_space<vmem>>, %arg2: memref<3x3x128xf32, #tpu.memory_space<vmem>>, %arg3: memref<3x128x128xbf16, #tpu.memory_space<vmem>>, %arg4: memref<16x128xf32, #tpu.memory_space<vmem>>) attributes {dimension_semantics = [#tpu.dimension_semantics<arbitrary>], iteration_bounds = array<i64: 1>, scalar_prefetch = 0 : i64, scratch_operands = 0 : i64, tpu.core_type = #tpu.core_type<tc>, window_params = [{pipeline_mode = #tpu.pipeline_mode<synchronous>, transform_indices = @transform_0, window_bounds = array<i64: 16, 128>}, {pipeline_mode = #tpu.pipeline_mode<synchronous>, transform_indices = @transform_1, window_bounds = array<i64: 3, 3, 128>}, {pipeline_mode = #tpu.pipeline_mode<synchronous>, transform_indices = @transform_2, window_bounds = array<i64: 3, 128, 128>}, {pipeline_mode = #tpu.pipeline_mode<synchronous>, transform_indices = @transform_3, window_bounds = array<i64: 16, 128>}]} {
    %c0 = arith.constant 0 : index
    %c0_0 = arith.constant 0 : index
    %0 = vector.load %arg1[%c0, %c0_0] : memref<16x128xf32, #tpu.memory_space<vmem>>, vector<16x128xf32>
    %c0_1 = arith.constant 0 : index
    %c0_2 = arith.constant 0 : index
    %c0_3 = arith.constant 0 : index
    %1 = vector.load %arg2[%c0_1, %c0_2, %c0_3] : memref<3x3x128xf32, #tpu.memory_space<vmem>>, vector<1x1x128xf32>
    %2 = vector.shape_cast %1 : vector<1x1x128xf32> to vector<1x128xf32>
    %c0_4 = arith.constant 0 : index
    %c1 = arith.constant 1 : index
    %c0_5 = arith.constant 0 : index
    %3 = vector.load %arg2[%c0_4, %c1, %c0_5] : memref<3x3x128xf32, #tpu.memory_space<vmem>>, vector<1x1x128xf32>
    %4 = vector.shape_cast %3 : vector<1x1x128xf32> to vector<1x128xf32>
    %c0_6 = arith.constant 0 : index
    %c2 = arith.constant 2 : index
    %c0_7 = arith.constant 0 : index
    %5 = vector.load %arg2[%c0_6, %c2, %c0_7] : memref<3x3x128xf32, #tpu.memory_space<vmem>>, vector<1x1x128xf32>
    %6 = vector.shape_cast %5 : vector<1x1x128xf32> to vector<1x128xf32>
    %cst = arith.constant dense<0.000000e+00> : vector<128xf32>
    %7 = vector.multi_reduction <add>, %0, %cst [0] : vector<16x128xf32> to vector<128xf32>
    %8 = vector.shape_cast %7 : vector<128xf32> to vector<1x128xf32>
    %cst_8 = arith.constant 1.600000e+01 : f32
    %9 = vector.broadcast %cst_8 : f32 to vector<1x128xf32>
    %10 = arith.divf %8, %9 : vector<1x128xf32>
    %11 = vector.broadcast %10 : vector<1x128xf32> to vector<16x128xf32>
    %12 = arith.subf %0, %11 : vector<16x128xf32>
    %13 = arith.mulf %12, %12 : vector<16x128xf32>
    %cst_9 = arith.constant dense<0.000000e+00> : vector<128xf32>
    %14 = vector.multi_reduction <add>, %13, %cst_9 [0] : vector<16x128xf32> to vector<128xf32>
    %15 = vector.shape_cast %14 : vector<128xf32> to vector<1x128xf32>
    %cst_10 = arith.constant 1.600000e+01 : f32
    %16 = vector.broadcast %cst_10 : f32 to vector<1x128xf32>
    %17 = arith.divf %15, %16 : vector<1x128xf32>
    %cst_11 = arith.constant 9.99999974E-6 : f32
    %18 = vector.broadcast %cst_11 : f32 to vector<1x128xf32>
    %19 = arith.addf %17, %18 : vector<1x128xf32>
    %20 = math.rsqrt %19 : vector<1x128xf32>
    %21 = arith.mulf %20, %2 : vector<1x128xf32>
    %22 = vector.broadcast %21 : vector<1x128xf32> to vector<16x128xf32>
    %23 = arith.mulf %12, %22 : vector<16x128xf32>
    %24 = vector.broadcast %4 : vector<1x128xf32> to vector<16x128xf32>
    %25 = arith.addf %23, %24 : vector<16x128xf32>
    %cst_12 = arith.constant 5.000000e-01 : f32
    %26 = vector.broadcast %cst_12 : f32 to vector<16x128xf32>
    %27 = arith.mulf %26, %25 : vector<16x128xf32>
    %cst_13 = arith.constant 0.707106769 : f32
    %28 = vector.broadcast %cst_13 : f32 to vector<16x128xf32>
    %29 = arith.mulf %25, %28 : vector<16x128xf32>
    %30 = math.erf %29 : vector<16x128xf32>
    %cst_14 = arith.constant 1.000000e+00 : f32
    %31 = vector.broadcast %cst_14 : f32 to vector<16x128xf32>
    %32 = arith.addf %31, %30 : vector<16x128xf32>
    %33 = arith.mulf %27, %32 : vector<16x128xf32>
    %34 = arith.truncf %33 : vector<16x128xf32> to vector<16x128xbf16>
    %c0_15 = arith.constant 0 : index
    %c0_16 = arith.constant 0 : index
    %c0_17 = arith.constant 0 : index
    %35 = vector.load %arg3[%c0_15, %c0_16, %c0_17] : memref<3x128x128xbf16, #tpu.memory_space<vmem>>, vector<1x128x128xbf16>
    %36 = vector.shape_cast %35 : vector<1x128x128xbf16> to vector<128x128xbf16>
    %cst_18 = arith.constant dense<0.000000e+00> : vector<16x128xf32>
    %37 = tpu.matmul %34, %36, %cst_18 {dimension_numbers = #tpu.dot_dimension_numbers<[1], [0], [0], [1], [0, 0, 1, 1], [], []>} : vector<16x128xbf16>, vector<128x128xbf16>, vector<16x128xf32> -> vector<16x128xf32>
    %38 = vector.broadcast %6 : vector<1x128xf32> to vector<16x128xf32>
    %39 = arith.addf %37, %38 : vector<16x128xf32>
    %c1_19 = arith.constant 1 : index
    %c0_20 = arith.constant 0 : index
    %c0_21 = arith.constant 0 : index
    %40 = vector.load %arg2[%c1_19, %c0_20, %c0_21] : memref<3x3x128xf32, #tpu.memory_space<vmem>>, vector<1x1x128xf32>
    %41 = vector.shape_cast %40 : vector<1x1x128xf32> to vector<1x128xf32>
    %c1_22 = arith.constant 1 : index
    %c1_23 = arith.constant 1 : index
    %c0_24 = arith.constant 0 : index
    %42 = vector.load %arg2[%c1_22, %c1_23, %c0_24] : memref<3x3x128xf32, #tpu.memory_space<vmem>>, vector<1x1x128xf32>
    %43 = vector.shape_cast %42 : vector<1x1x128xf32> to vector<1x128xf32>
    %c1_25 = arith.constant 1 : index
    %c2_26 = arith.constant 2 : index
    %c0_27 = arith.constant 0 : index
    %44 = vector.load %arg2[%c1_25, %c2_26, %c0_27] : memref<3x3x128xf32, #tpu.memory_space<vmem>>, vector<1x1x128xf32>
    %45 = vector.shape_cast %44 : vector<1x1x128xf32> to vector<1x128xf32>
    %cst_28 = arith.constant dense<0.000000e+00> : vector<128xf32>
    %46 = vector.multi_reduction <add>, %39, %cst_28 [0] : vector<16x128xf32> to vector<128xf32>
    %47 = vector.shape_cast %46 : vector<128xf32> to vector<1x128xf32>
    %cst_29 = arith.constant 1.600000e+01 : f32
    %48 = vector.broadcast %cst_29 : f32 to vector<1x128xf32>
    %49 = arith.divf %47, %48 : vector<1x128xf32>
    %50 = vector.broadcast %49 : vector<1x128xf32> to vector<16x128xf32>
    %51 = arith.subf %39, %50 : vector<16x128xf32>
    %52 = arith.mulf %51, %51 : vector<16x128xf32>
    %cst_30 = arith.constant dense<0.000000e+00> : vector<128xf32>
    %53 = vector.multi_reduction <add>, %52, %cst_30 [0] : vector<16x128xf32> to vector<128xf32>
    %54 = vector.shape_cast %53 : vector<128xf32> to vector<1x128xf32>
    %cst_31 = arith.constant 1.600000e+01 : f32
    %55 = vector.broadcast %cst_31 : f32 to vector<1x128xf32>
    %56 = arith.divf %54, %55 : vector<1x128xf32>
    %cst_32 = arith.constant 9.99999974E-6 : f32
    %57 = vector.broadcast %cst_32 : f32 to vector<1x128xf32>
    %58 = arith.addf %56, %57 : vector<1x128xf32>
    %59 = math.rsqrt %58 : vector<1x128xf32>
    %60 = arith.mulf %59, %41 : vector<1x128xf32>
    %61 = vector.broadcast %60 : vector<1x128xf32> to vector<16x128xf32>
    %62 = arith.mulf %51, %61 : vector<16x128xf32>
    %63 = vector.broadcast %43 : vector<1x128xf32> to vector<16x128xf32>
    %64 = arith.addf %62, %63 : vector<16x128xf32>
    %cst_33 = arith.constant 5.000000e-01 : f32
    %65 = vector.broadcast %cst_33 : f32 to vector<16x128xf32>
    %66 = arith.mulf %65, %64 : vector<16x128xf32>
    %cst_34 = arith.constant 0.707106769 : f32
    %67 = vector.broadcast %cst_34 : f32 to vector<16x128xf32>
    %68 = arith.mulf %64, %67 : vector<16x128xf32>
    %69 = math.erf %68 : vector<16x128xf32>
    %cst_35 = arith.constant 1.000000e+00 : f32
    %70 = vector.broadcast %cst_35 : f32 to vector<16x128xf32>
    %71 = arith.addf %70, %69 : vector<16x128xf32>
    %72 = arith.mulf %66, %71 : vector<16x128xf32>
    %73 = arith.truncf %72 : vector<16x128xf32> to vector<16x128xbf16>
    %c1_36 = arith.constant 1 : index
    %c0_37 = arith.constant 0 : index
    %c0_38 = arith.constant 0 : index
    %74 = vector.load %arg3[%c1_36, %c0_37, %c0_38] : memref<3x128x128xbf16, #tpu.memory_space<vmem>>, vector<1x128x128xbf16>
    %75 = vector.shape_cast %74 : vector<1x128x128xbf16> to vector<128x128xbf16>
    %cst_39 = arith.constant dense<0.000000e+00> : vector<16x128xf32>
    %76 = tpu.matmul %73, %75, %cst_39 {dimension_numbers = #tpu.dot_dimension_numbers<[1], [0], [0], [1], [0, 0, 1, 1], [], []>} : vector<16x128xbf16>, vector<128x128xbf16>, vector<16x128xf32> -> vector<16x128xf32>
    %77 = vector.broadcast %45 : vector<1x128xf32> to vector<16x128xf32>
    %78 = arith.addf %76, %77 : vector<16x128xf32>
    %c2_40 = arith.constant 2 : index
    %c0_41 = arith.constant 0 : index
    %c0_42 = arith.constant 0 : index
    %79 = vector.load %arg2[%c2_40, %c0_41, %c0_42] : memref<3x3x128xf32, #tpu.memory_space<vmem>>, vector<1x1x128xf32>
    %80 = vector.shape_cast %79 : vector<1x1x128xf32> to vector<1x128xf32>
    %c2_43 = arith.constant 2 : index
    %c1_44 = arith.constant 1 : index
    %c0_45 = arith.constant 0 : index
    %81 = vector.load %arg2[%c2_43, %c1_44, %c0_45] : memref<3x3x128xf32, #tpu.memory_space<vmem>>, vector<1x1x128xf32>
    %82 = vector.shape_cast %81 : vector<1x1x128xf32> to vector<1x128xf32>
    %c2_46 = arith.constant 2 : index
    %c2_47 = arith.constant 2 : index
    %c0_48 = arith.constant 0 : index
    %83 = vector.load %arg2[%c2_46, %c2_47, %c0_48] : memref<3x3x128xf32, #tpu.memory_space<vmem>>, vector<1x1x128xf32>
    %84 = vector.shape_cast %83 : vector<1x1x128xf32> to vector<1x128xf32>
    %cst_49 = arith.constant dense<0.000000e+00> : vector<128xf32>
    %85 = vector.multi_reduction <add>, %78, %cst_49 [0] : vector<16x128xf32> to vector<128xf32>
    %86 = vector.shape_cast %85 : vector<128xf32> to vector<1x128xf32>
    %cst_50 = arith.constant 1.600000e+01 : f32
    %87 = vector.broadcast %cst_50 : f32 to vector<1x128xf32>
    %88 = arith.divf %86, %87 : vector<1x128xf32>
    %89 = vector.broadcast %88 : vector<1x128xf32> to vector<16x128xf32>
    %90 = arith.subf %78, %89 : vector<16x128xf32>
    %91 = arith.mulf %90, %90 : vector<16x128xf32>
    %cst_51 = arith.constant dense<0.000000e+00> : vector<128xf32>
    %92 = vector.multi_reduction <add>, %91, %cst_51 [0] : vector<16x128xf32> to vector<128xf32>
    %93 = vector.shape_cast %92 : vector<128xf32> to vector<1x128xf32>
    %cst_52 = arith.constant 1.600000e+01 : f32
    %94 = vector.broadcast %cst_52 : f32 to vector<1x128xf32>
    %95 = arith.divf %93, %94 : vector<1x128xf32>
    %cst_53 = arith.constant 9.99999974E-6 : f32
    %96 = vector.broadcast %cst_53 : f32 to vector<1x128xf32>
    %97 = arith.addf %95, %96 : vector<1x128xf32>
    %98 = math.rsqrt %97 : vector<1x128xf32>
    %99 = arith.mulf %98, %80 : vector<1x128xf32>
    %100 = vector.broadcast %99 : vector<1x128xf32> to vector<16x128xf32>
    %101 = arith.mulf %90, %100 : vector<16x128xf32>
    %102 = vector.broadcast %82 : vector<1x128xf32> to vector<16x128xf32>
    %103 = arith.addf %101, %102 : vector<16x128xf32>
    %cst_54 = arith.constant 5.000000e-01 : f32
    %104 = vector.broadcast %cst_54 : f32 to vector<16x128xf32>
    %105 = arith.mulf %104, %103 : vector<16x128xf32>
    %cst_55 = arith.constant 0.707106769 : f32
    %106 = vector.broadcast %cst_55 : f32 to vector<16x128xf32>
    %107 = arith.mulf %103, %106 : vector<16x128xf32>
    %108 = math.erf %107 : vector<16x128xf32>
    %cst_56 = arith.constant 1.000000e+00 : f32
    %109 = vector.broadcast %cst_56 : f32 to vector<16x128xf32>
    %110 = arith.addf %109, %108 : vector<16x128xf32>
    %111 = arith.mulf %105, %110 : vector<16x128xf32>
    %112 = arith.truncf %111 : vector<16x128xf32> to vector<16x128xbf16>
    %c2_57 = arith.constant 2 : index
    %c0_58 = arith.constant 0 : index
    %c0_59 = arith.constant 0 : index
    %113 = vector.load %arg3[%c2_57, %c0_58, %c0_59] : memref<3x128x128xbf16, #tpu.memory_space<vmem>>, vector<1x128x128xbf16>
    %114 = vector.shape_cast %113 : vector<1x128x128xbf16> to vector<128x128xbf16>
    %cst_60 = arith.constant dense<0.000000e+00> : vector<16x128xf32>
    %115 = tpu.matmul %112, %114, %cst_60 {dimension_numbers = #tpu.dot_dimension_numbers<[1], [0], [0], [1], [0, 0, 1, 1], [], []>} : vector<16x128xbf16>, vector<128x128xbf16>, vector<16x128xf32> -> vector<16x128xf32>
    %116 = vector.broadcast %84 : vector<1x128xf32> to vector<16x128xf32>
    %117 = arith.addf %115, %116 : vector<16x128xf32>
    %118 = arith.addf %117, %0 : vector<16x128xf32>
    %c0_61 = arith.constant 0 : index
    %c0_62 = arith.constant 0 : index
    %119 = vector.load %arg4[%c0_61, %c0_62] : memref<16x128xf32, #tpu.memory_space<vmem>>, vector<16x128xf32>
    tpu.vector_store %arg4[%c0_61, %c0_62], %118 {strides = array<i32>} : memref<16x128xf32, #tpu.memory_space<vmem>>, vector<16x128xf32>,
    return
  }
  func.func @transform_0(%arg0: i32) -> (i32, i32) {
    %c0_i32 = arith.constant 0 : i32
    %c0_i32_0 = arith.constant 0 : i32
    %c0_i32_1 = arith.constant 0 : i32
    return %c0_i32, %c0_i32_0 : i32, i32
  }
  func.func @transform_1(%arg0: i32) -> (i32, i32, i32) {
    %c0_i32 = arith.constant 0 : i32
    %c0_i32_0 = arith.constant 0 : i32
    %c0_i32_1 = arith.constant 0 : i32
    %c0_i32_2 = arith.constant 0 : i32
    return %c0_i32, %c0_i32_0, %c0_i32_1 : i32, i32, i32
  }
  func.func @transform_2(%arg0: i32) -> (i32, i32, i32) {
    %c0_i32 = arith.constant 0 : i32
    %c0_i32_0 = arith.constant 0 : i32
    %c0_i32_1 = arith.constant 0 : i32
    %c0_i32_2 = arith.constant 0 : i32
    return %c0_i32, %c0_i32_0, %c0_i32_1 : i32, i32, i32
  }
  func.func @transform_3(%arg0: i32) -> (i32, i32) {
    %c0_i32 = arith.constant 0 : i32
    %c0_i32_0 = arith.constant 0 : i32
    %c0_i32_1 = arith.constant 0 : i32
    return %c0_i32, %c0_i32_0 : i32, i32
  }
}

</mosaic_0001>

<bundles_post_ra>
// kernel: tpu_custom_call.1
= control target key start
LH: loop header
LB: loop body
LE: loop exit
PB: predicated region body
PF: predicated region fallthrough
CT: control target
= control target key end

     0   :  { %8 = vsyncpa [#allocation3], 0  ;;  %s908_s0 = inlined_call_operand.hbm [shape: f32[16,128], index: 0, kind: input, shape index: {}]   ;;  %s909_s1 = inlined_call_operand.hbm [shape: f32[3,3,128], index: 1, kind: input, shape index: {}]   ;;  %s910_s2 = inlined_call_operand.hbm [shape: bf16[3,128,128], index: 2, kind: input, shape index: {}]   ;;  %s911_s3 = inlined_call_operand.hbm [shape: f32[16,128], index: 3, kind: output, shape index: {}]  }
   0x1   :  { %9 = vsyncpa [#allocation6], 0 }
   0x2   :  { %10 = vsyncpa [#allocation4], 0  ;;  %s815_s12 = smov [#allocation5]  }
   0x3   :  { %s28_s13 = sshll.u32 %s815_s12, 4  ;;  %s29_s13 = int_to_ptr.vmem [resolvable:$true] %s28_s13 }
   0x4   :  { %s737_s14 = scalar_lea.vmem %s29_s13, 192  ;;  %p742_p1 = scmp.lt.s32.totalorder %s29_s13, %s29_s13 }
   0x5   :  { %p738_p0 = scmp.ne.s32.totalorder %s29_s13, %s737_s14  ;;  %p743_p2 = scmp.lt.s32.totalorder %s737_s14, %s737_s14 }
   0x7   :  { %p744_p3 = por %p743_p2, %p742_p1 }
   0x9   :  { %p745_p4 = pnand %p744_p3, %p738_p0 }
   0xb   :  { %748 = shalt.err (!%p745_p4)
}
   0xc   :  { %s816_s15 = smov 64   ;;  %s817_s16 = smov 4  }
   0xd   :  { %34 = dma.hbm_to_vmem [thread:$0]  %s909_s1, 192, %s29_s13, [#allocation6], %s816_s15, %s816_s15, %s817_s16  }
   0xe   :  { %s818_s19 = smov [#allocation2]  }
   0xf   :  { %s16_s20 = sshll.u32 %s818_s19, 4  ;;  %s17_s20 = int_to_ptr.vmem [resolvable:$true] %s16_s20 }
  0x10   :  { %s757_s21 = scalar_lea.vmem %s17_s20, 256  ;;  %p762_p6 = scmp.lt.s32.totalorder %s17_s20, %s17_s20 }
  0x11   :  { %p758_p5 = scmp.ne.s32.totalorder %s17_s20, %s757_s21  ;;  %p763_p7 = scmp.lt.s32.totalorder %s757_s21, %s757_s21 }
  0x13   :  { %p764_p8 = por %p763_p7, %p762_p6 }
  0x15   :  { %p765_p9 = pnand %p764_p8, %p758_p5 }
  0x17   :  { %768 = shalt.err (!%p765_p9)
}
  0x18   :  { %s819_s22 = smov 128   ;;  %s820_s23 = smov 8  }
  0x19   :  { %22 = dma.hbm_to_vmem [thread:$0]  %s908_s0, 256, %s17_s20, [#allocation3], %s819_s22, %s819_s22, %s820_s23  }
  0x1a   :  { %s821_s1 = smov [#allocation7]  }
  0x1b   :  { %s40_s26 = sshll.u32 %s821_s1, 4  ;;  %s41_s26 = int_to_ptr.vmem [resolvable:$true] %s40_s26 }
  0x1c   :  { %s777_s27 = scalar_lea.vmem %s41_s26, 3072  ;;  %p782_p11 = scmp.lt.s32.totalorder %s41_s26, %s41_s26 }
  0x1d   :  { %p778_p10 = scmp.ne.s32.totalorder %s41_s26, %s777_s27  ;;  %p783_p12 = scmp.lt.s32.totalorder %s777_s27, %s777_s27 }
  0x1f   :  { %p784_p13 = por %p783_p12, %p782_p11 }
  0x21   :  { %p785_p0 = pnand %p784_p13, %p778_p10 }
  0x23   :  { %788 = shalt.err (!%p785_p0)
}
  0x24   :  { %46 = dma.hbm_to_vmem [thread:$0]  %s910_s2, 3072, %s41_s26, [#allocation6], %s816_s15, %s816_s15, %s817_s16  }
  0x25   :  { %809 = dma.done.wait [#allocation3], 256  }
  0x26   :  { %810 = vsyncadd [#allocation3], 4294967040 }
  0x27   :  { %811 = dma.done.wait [#allocation6], 3264  }
  0x28   :  { %812 = vsyncadd [#allocation6], 4294964032  ;;  %v822_v0 = vmov 0.0   ;;  %vm823_vm0 = vmmov 0   ;;  %v687_v1 = vld [vmem:[#allocation7 + $0x38] sm:$0xff]   ;;  %v688_v2 = vld [vmem:[#allocation7 + $0x30] sm:$0xff]   ;;  %v86_v32 = vlaneseq }
  0x29   :  { %617 = vmatprep.subr.bf16.mxu0 %v822_v0  ;;  %633 = vmatprep.mubr.msk.bf16.mxu0 %vm823_vm0, %v822_v0  ;;  %v689_v3 = vld [vmem:[#allocation7 + $0x28] sm:$0xff]   ;;  %v690_v6 = vld [vmem:[#allocation7 + $0x20] sm:$0xff]   ;;  %v691_v9 = vld [vmem:[#allocation7 + $0x18] sm:$0xff]   ;;  %s824_s0 = smov [#allocation8]  }
  0x2a   :  { %637 = vmatprep.subr.bf16.mxu1 %v822_v0  ;;  %653 = vmatprep.mubr.msk.bf16.mxu1 %vm823_vm0, %v822_v0  ;;  %v865_v4 = vld [vmem:[#allocation2] sm:$0xff]  ;;  %v867_v5 = vld [vmem:[#allocation2 + $0x8] sm:$0xff]  ;;  %v87_v33 = vshrl.u32 %v86_v32, 7  ;;  %v59_v34 = vld [vmem:[#allocation5] sm:$0x1]  ;;  %s547_s2 = sshll.u32 %s824_s0, 4  ;;  %s548_s2 = int_to_ptr.vmem [resolvable:$true] %s547_s2 }
  0x2b   :  { %618 = vmatpush3.bf16.msra.mxu0 %v687_v1  ;;  %v62_v7 = vadd.f32 %v867_v5, %v865_v4  ;;  %v692_v12 = vld [vmem:[#allocation7 + $0x10] sm:$0xff]   ;;  %v693_v16 = vld [vmem:[#allocation7 + $0x8] sm:$0xff]   ;;  %v694_v20 = vld [vmem:[#allocation7] sm:$0xff]   ;;  %s789_s30 = scalar_lea.vmem %s548_s2, 256  ;;  %p794_p2 = scmp.lt.s32.totalorder %s548_s2, %s548_s2 }
  0x2c   :  { %619 = vmatprep.subr.bf16.mxu0 %v822_v0  ;;  %v879_v35 = vsub.s32 0, %v87_v33  ;;  %v560_v39 = vld [vmem:[#allocation5 + $0x1] ss:$0 sm:$0xff]  ;;  %v695_v55 = vld [vmem:[#allocation7 + $0x78] sm:$0xff]   ;;  %v697_v57 = vld [vmem:[#allocation7 + $0x68] sm:$0xff]   ;;  %p790_p1 = scmp.ne.s32.totalorder %s548_s2, %s789_s30  ;;  %p795_p3 = scmp.lt.s32.totalorder %s789_s30, %s789_s30 }
  0x2d   :  { %v63_v8 = vrot.slane %v62_v7, 4  ;;  %638 = vmatpush3.bf16.msra.mxu1 %v695_v55  ;;  %v696_v56 = vld [vmem:[#allocation7 + $0x70] sm:$0xff]   ;;  %v698_v58 = vld [vmem:[#allocation7 + $0x60] sm:$0xff]   ;;  %v699_v59 = vld [vmem:[#allocation7 + $0x58] sm:$0xff]  }
  0x2e   :  { %639 = vmatprep.subr.bf16.mxu1 %v822_v0  ;;  %v700_v60 = vld [vmem:[#allocation7 + $0x50] sm:$0xff]   ;;  %v701_v61 = vld [vmem:[#allocation7 + $0x48] sm:$0xff]   ;;  %v702_v62 = vld [vmem:[#allocation7 + $0x40] sm:$0xff]   ;;  %p796_p4 = por %p795_p3, %p794_p2 }
  0x2f   :  { %620 = vmatpush3.bf16.msra.mxu0 %v688_v2  ;;  %v64_v10 = vadd.f32 %v63_v8, %v62_v7  ;;  %v561_v1 = vld [vmem:[#allocation5 + $0x2] ss:$0 sm:$0xff]  ;;  %v707_v55 = vld [vmem:[#allocation7 + $0x98] sm:$0xff]  }
  0x30   :  { %621 = vmatprep.subr.bf16.mxu0 %v822_v0  ;;  %p797_p5 = pnand %p796_p4, %p790_p1 }
  0x31   :  { %v65_v11 = vrot.slane %v64_v10, 2  ;;  %640 = vmatpush3.bf16.msra.mxu1 %v696_v56  ;;  %v708_v56 = vld [vmem:[#allocation7 + $0x90] sm:$0xff]  }
  0x32   :  { %641 = vmatprep.subr.bf16.mxu1 %v822_v0 }
  0x33   :  { %622 = vmatpush3.bf16.msra.mxu0 %v689_v3  ;;  %v66_v13 = vadd.f32 %v65_v11, %v64_v10 }
  0x34   :  { %623 = vmatprep.subr.bf16.mxu0 %v822_v0 }
  0x35   :  { %v67_v14 = vrot.slane %v66_v13, 1  ;;  %642 = vmatpush3.bf16.msra.mxu1 %v697_v57  ;;  %v709_v57 = vld [vmem:[#allocation7 + $0x88] sm:$0xff]  }
  0x36   :  { %643 = vmatprep.subr.bf16.mxu1 %v822_v0 }
  0x37   :  { %624 = vmatpush3.bf16.msra.mxu0 %v690_v6  ;;  %v68_v15 = vadd.f32 %v67_v14, %v66_v13 }
  0x38   :  { %625 = vmatprep.subr.bf16.mxu0 %v822_v0 }
  0x39   :  { %v70_v17 = vmul.f32 0.0625, %v68_v15  ;;  %644 = vmatpush3.bf16.msra.mxu1 %v698_v58  ;;  %v710_v58 = vld [vmem:[#allocation7 + $0x80] sm:$0xff]  }
  0x3a   :  { %645 = vmatprep.subr.bf16.mxu1 %v822_v0 }
  0x3b   :  { %626 = vmatpush3.bf16.msra.mxu0 %v691_v9  ;;  %v71_v18 = vsub.f32 %v865_v4, %v70_v17  ;;  %v72_v19 = vsub.f32 %v867_v5, %v70_v17 }
  0x3c   :  { %627 = vmatprep.subr.bf16.mxu0 %v822_v0 }
  0x3d   :  { %v73_v21 = vmul.f32 %v71_v18, %v71_v18  ;;  %v74_v22 = vmul.f32 %v72_v19, %v72_v19  ;;  %646 = vmatpush3.bf16.msra.mxu1 %v699_v59 }
  0x3e   :  { %647 = vmatprep.subr.bf16.mxu1 %v822_v0 }
  0x3f   :  { %628 = vmatpush3.bf16.msra.mxu0 %v692_v12  ;;  %v75_v23 = vadd.f32 %v74_v22, %v73_v21 }
  0x40   :  { %629 = vmatprep.subr.bf16.mxu0 %v822_v0 }
  0x41   :  { %v76_v24 = vrot.slane %v75_v23, 4  ;;  %648 = vmatpush3.bf16.msra.mxu1 %v700_v60  ;;  %v571_v60 = vld [vmem:[#allocation5 + $0x6] ss:$0 sm:$0xff] }
  0x42   :  { %649 = vmatprep.subr.bf16.mxu1 %v822_v0 }
  0x43   :  { %630 = vmatpush3.bf16.msra.mxu0 %v693_v16  ;;  %v77_v25 = vadd.f32 %v76_v24, %v75_v23 }
  0x44   :  { %631 = vmatprep.subr.bf16.mxu0 %v822_v0 }
  0x45   :  { %v78_v26 = vrot.slane %v77_v25, 2  ;;  %650 = vmatpush3.bf16.msra.mxu1 %v701_v61 }
  0x46   :  { %651 = vmatprep.subr.bf16.mxu1 %v822_v0 }
  0x47   :  { %632 = vmatpush3.bf16.msra.mxu0 %v694_v20  ;;  %v79_v27 = vadd.f32 %v78_v26, %v77_v25 }
  0x48   :  { %657 = vmatprep.subr.bf16.mxu0 %v822_v0 }
  0x49   :  { %v80_v28 = vrot.slane %v79_v27, 1  ;;  %652 = vmatpush3.bf16.msra.mxu1 %v702_v62 }
  0x4b   :  { %v81_v29 = vadd.f32 %v80_v28, %v79_v27 }
  0x4d   :  { %v82_v30 = vmul.f32 0.0625, %v81_v29 }
  0x4f   :  { %v83_v31 = vadd.f32 1e-05, %v82_v30  ;;  %v219_v30 = vld [vmem:[#allocation5 + $0x4] sm:$0x1] }
  0x51   :  { %711 = vrsqrt.f32 %v83_v31 }
  0x5e   :  { %v712_v36 = vpop.eup %711 }
  0x5f   :  { %v85_v37 = vmul.f32 %v712_v36, %v59_v34  ;;  %v570_v34 = vld [vmem:[#allocation5 + $0x5] ss:$0 sm:$0xff] }
  0x61   :  { %v89_v38 = vrot.slane %v85_v37, %v879_v35 }
  0x63   :  { %v90_v40 = vmul.f32 %v89_v38, %v71_v18  ;;  %v91_v41 = vmul.f32 %v89_v38, %v72_v19 }
  0x65   :  { %v96_v42 = vadd.f32 %v560_v39, %v90_v40  ;;  %v97_v43 = vadd.f32 %v560_v39, %v91_v41 }
  0x67   :  { %v100_v44 = vmul.f32 0.70710677, %v96_v42  ;;  %v101_v45 = vmul.f32 0.70710677, %v97_v43  ;;  %v98_v46 = vmul.f32 0.5, %v96_v42  ;;  %v99_v48 = vmul.f32 0.5, %v97_v43 }
  0x69   :  { %713 = verf.f32 %v100_v44 }
  0x6a   :  { %715 = verf.f32 %v101_v45 }
  0x76   :  { %v714_v47 = vpop.eup %713 }
  0x77   :  { %v716_v49 = vpop.eup %715  ;;  %v104_v50 = vadd.f32 1.0, %v714_v47 }
  0x78   :  { %v105_v51 = vadd.f32 1.0, %v716_v49 }
  0x79   :  { %v106_v52 = vmul.f32 %v104_v50, %v98_v46 }
  0x7a   :  { %v107_v53 = vmul.f32 %v105_v51, %v99_v48  ;;  %v703_v51 = vld [vmem:[#allocation7 + $0xb8] sm:$0xff]  }
  0x7c   :  { %v108_v54 = vpack.c.bf16 %v107_v53, %v106_v52  ;;  %v704_v52 = vld [vmem:[#allocation7 + $0xb0] sm:$0xff]   ;;  %v705_v53 = vld [vmem:[#allocation7 + $0xa8] sm:$0xff]  }
  0x7e   :  { %634 = vmatmul.mubr.bf16.vlgmr.msra.gmra.mxu0 %v108_v54  ;;  %v706_v54 = vld [vmem:[#allocation7 + $0xa0] sm:$0xff]  }
  0x7f   :  { %673 = vmatprep.mubr.msk.bf16.mxu0 %vm823_vm0, %v822_v0  ;;  %658 = vmatpush3.bf16.msra.mxu0 %v703_v51 }
  0x80   :  { %659 = vmatprep.subr.bf16.mxu0 %v822_v0 }
  0x83   :  { %660 = vmatpush3.bf16.msra.mxu0 %v704_v52 }
  0x84   :  { %661 = vmatprep.subr.bf16.mxu0 %v822_v0 }
  0x87   :  { %662 = vmatpush3.bf16.msra.mxu0 %v705_v53 }
  0x88   :  { %663 = vmatprep.subr.bf16.mxu0 %v822_v0 }
  0x8b   :  { %664 = vmatpush3.bf16.msra.mxu0 %v706_v54 }
  0x8c   :  { %665 = vmatprep.subr.bf16.mxu0 %v822_v0 }
  0x8f   :  { %666 = vmatpush3.bf16.msra.mxu0 %v707_v55 }
  0x90   :  { %667 = vmatprep.subr.bf16.mxu0 %v822_v0 }
  0x93   :  { %668 = vmatpush3.bf16.msra.mxu0 %v708_v56 }
  0x94   :  { %669 = vmatprep.subr.bf16.mxu0 %v822_v0 }
  0x97   :  { %670 = vmatpush3.bf16.msra.mxu0 %v709_v57 }
  0x98   :  { %671 = vmatprep.subr.bf16.mxu0 %v822_v0 }
  0x9b   :  { %672 = vmatpush3.bf16.msra.mxu0 %v710_v58 }
 0x13e   :  { %v211_v63 = vpop.f32.mrf.mxu0 }
 0x13f   :  { %v212_v6 = vadd.f32 %v561_v1, %v211_v63 }
 0x140   :  { %v635_v2 = vpop.f32.mrf.mxu0 }
 0x142   :  { %v214_v3 = vpop.f32.mrf.mxu0 }
 0x143   :  { %v215_v7 = vadd.f32 %v561_v1, %v214_v3 }
 0x144   :  { %v636_v8 = vpop.f32.mrf.mxu0 }
 0x145   :  { %v222_v9 = vadd.f32 %v215_v7, %v212_v6 }
 0x147   :  { %v223_v10 = vrot.slane %v222_v9, 4 }
 0x149   :  { %v224_v11 = vadd.f32 %v223_v10, %v222_v9 }
 0x14b   :  { %v225_v12 = vrot.slane %v224_v11, 2 }
 0x14d   :  { %v226_v13 = vadd.f32 %v225_v12, %v224_v11 }
 0x14f   :  { %v227_v14 = vrot.slane %v226_v13, 1 }
 0x151   :  { %v228_v15 = vadd.f32 %v227_v14, %v226_v13 }
 0x153   :  { %v229_v16 = vmul.f32 0.0625, %v228_v15 }
 0x155   :  { %v230_v17 = vsub.f32 %v212_v6, %v229_v16  ;;  %v231_v18 = vsub.f32 %v215_v7, %v229_v16 }
 0x157   :  { %v232_v19 = vmul.f32 %v230_v17, %v230_v17  ;;  %v233_v20 = vmul.f32 %v231_v18, %v231_v18 }
 0x159   :  { %v234_v21 = vadd.f32 %v233_v20, %v232_v19 }
 0x15b   :  { %v235_v22 = vrot.slane %v234_v21, 4 }
 0x15d   :  { %v236_v23 = vadd.f32 %v235_v22, %v234_v21 }
 0x15f   :  { %v237_v24 = vrot.slane %v236_v23, 2 }
 0x161   :  { %v238_v25 = vadd.f32 %v237_v24, %v236_v23 }
 0x163   :  { %v239_v26 = vrot.slane %v238_v25, 1 }
 0x165   :  { %v240_v27 = vadd.f32 %v239_v26, %v238_v25  ;;  %v379_v25 = vld [vmem:[#allocation5 + $0x8] sm:$0x1] }
 0x167   :  { %v241_v28 = vmul.f32 0.0625, %v240_v27 }
 0x169   :  { %v242_v29 = vadd.f32 1e-05, %v241_v28 }
 0x16b   :  { %717 = vrsqrt.f32 %v242_v29  ;;  %v580_v29 = vld [vmem:[#allocation5 + $0x9] ss:$0 sm:$0xff] }
 0x178   :  { %v718_v31 = vpop.eup %717 }
 0x179   :  { %v244_v32 = vmul.f32 %v718_v31, %v219_v30 }
 0x17b   :  { %v248_v33 = vrot.slane %v244_v32, %v879_v35 }
 0x17d   :  { %v249_v36 = vmul.f32 %v248_v33, %v230_v17  ;;  %v250_v37 = vmul.f32 %v248_v33, %v231_v18 }
 0x17f   :  { %v255_v38 = vadd.f32 %v570_v34, %v249_v36  ;;  %v256_v39 = vadd.f32 %v570_v34, %v250_v37 }
 0x181   :  { %v259_v40 = vmul.f32 0.70710677, %v255_v38  ;;  %v260_v41 = vmul.f32 0.70710677, %v256_v39  ;;  %v257_v44 = vmul.f32 0.5, %v255_v38  ;;  %v258_v46 = vmul.f32 0.5, %v256_v39 }
 0x183   :  { %719 = verf.f32 %v259_v40 }
 0x184   :  { %721 = verf.f32 %v260_v41 }
 0x190   :  { %v720_v42 = vpop.eup %719 }
 0x191   :  { %v722_v43 = vpop.eup %721  ;;  %v263_v45 = vadd.f32 1.0, %v720_v42 }
 0x192   :  { %v264_v47 = vadd.f32 1.0, %v722_v43 }
 0x193   :  { %v265_v48 = vmul.f32 %v263_v45, %v257_v44 }
 0x194   :  { %v266_v49 = vmul.f32 %v264_v47, %v258_v46 }
 0x196   :  { %v267_v50 = vpack.c.bf16 %v266_v49, %v265_v48 }
 0x198   :  { %654 = vmatmul.mubr.bf16.vlgmr.msra.gmra.mxu1 %v267_v50 }
 0x258   :  { %v371_v59 = vpop.f32.mrf.mxu1 }
 0x259   :  { %v372_v63 = vadd.f32 %v571_v60, %v371_v59 }
 0x25a   :  { %v655_v61 = vpop.f32.mrf.mxu1 }
 0x25c   :  { %v374_v62 = vpop.f32.mrf.mxu1 }
 0x25d   :  { %v375_v1 = vadd.f32 %v571_v60, %v374_v62 }
 0x25e   :  { %v656_v2 = vpop.f32.mrf.mxu1 }
 0x25f   :  { %v382_v3 = vadd.f32 %v375_v1, %v372_v63 }
 0x261   :  { %v383_v6 = vrot.slane %v382_v3, 4 }
 0x263   :  { %v384_v7 = vadd.f32 %v383_v6, %v382_v3 }
 0x265   :  { %v385_v8 = vrot.slane %v384_v7, 2 }
 0x267   :  { %v386_v9 = vadd.f32 %v385_v8, %v384_v7 }
 0x269   :  { %v387_v10 = vrot.slane %v386_v9, 1 }
 0x26b   :  { %v388_v11 = vadd.f32 %v387_v10, %v386_v9 }
 0x26d   :  { %v389_v12 = vmul.f32 0.0625, %v388_v11 }
 0x26f   :  { %v390_v13 = vsub.f32 %v372_v63, %v389_v12  ;;  %v391_v14 = vsub.f32 %v375_v1, %v389_v12 }
 0x271   :  { %v392_v15 = vmul.f32 %v390_v13, %v390_v13  ;;  %v393_v0 = vmul.f32 %v391_v14, %v391_v14 }
 0x273   :  { %v394_v16 = vadd.f32 %v393_v0, %v392_v15 }
 0x275   :  { %v395_v17 = vrot.slane %v394_v16, 4 }
 0x277   :  { %v396_v18 = vadd.f32 %v395_v17, %v394_v16 }
 0x279   :  { %v397_v19 = vrot.slane %v396_v18, 2 }
 0x27b   :  { %v398_v20 = vadd.f32 %v397_v19, %v396_v18 }
 0x27d   :  { %v399_v21 = vrot.slane %v398_v20, 1 }
 0x27f   :  { %v400_v22 = vadd.f32 %v399_v21, %v398_v20 }
 0x281   :  { %v401_v23 = vmul.f32 0.0625, %v400_v22 }
 0x283   :  { %v402_v24 = vadd.f32 1e-05, %v401_v23 }
 0x285   :  { %723 = vrsqrt.f32 %v402_v24 }
 0x292   :  { %v724_v26 = vpop.eup %723 }
 0x293   :  { %v404_v27 = vmul.f32 %v724_v26, %v379_v25 }
 0x295   :  { %v408_v28 = vrot.slane %v404_v27, %v879_v35  ;;  %v581_v35 = vld [vmem:[#allocation5 + $0xa] ss:$0 sm:$0xff] }
 0x297   :  { %v409_v30 = vmul.f32 %v408_v28, %v390_v13  ;;  %v410_v31 = vmul.f32 %v408_v28, %v391_v14 }
 0x299   :  { %v415_v32 = vadd.f32 %v580_v29, %v409_v30  ;;  %v416_v33 = vadd.f32 %v580_v29, %v410_v31 }
 0x29b   :  { %v419_v34 = vmul.f32 0.70710677, %v415_v32  ;;  %v420_v36 = vmul.f32 0.70710677, %v416_v33  ;;  %v417_v39 = vmul.f32 0.5, %v415_v32  ;;  %v418_v41 = vmul.f32 0.5, %v416_v33 }
 0x29d   :  { %725 = verf.f32 %v419_v34 }
 0x29e   :  { %727 = verf.f32 %v420_v36 }
 0x2aa   :  { %v726_v37 = vpop.eup %725 }
 0x2ab   :  { %v728_v38 = vpop.eup %727  ;;  %v423_v40 = vadd.f32 1.0, %v726_v37 }
 0x2ac   :  { %v424_v42 = vadd.f32 1.0, %v728_v38 }
 0x2ad   :  { %v425_v43 = vmul.f32 %v423_v40, %v417_v39 }
 0x2ae   :  { %v426_v44 = vmul.f32 %v424_v42, %v418_v41 }
 0x2b0   :  { %v427_v45 = vpack.c.bf16 %v426_v44, %v425_v43 }
 0x2b2   :  { %674 = vmatmul.mubr.bf16.vlgmr.msra.gmra.mxu0 %v427_v45 }
 0x372   :  { %v531_v46 = vpop.f32.mrf.mxu0 }
 0x373   :  { %v532_v47 = vadd.f32 %v581_v35, %v531_v46 }
 0x374   :  { %v675_v48 = vpop.f32.mrf.mxu0 }
 0x375   :  { %v538_v49 = vadd.f32 %v532_v47, %v865_v4 }
 0x376   :  { %v534_v50 = vpop.f32.mrf.mxu0 }
 0x377   :  { %540 = vst [vmem:[#allocation8] sm:$0xff] %v538_v49  ;;  %v535_v51 = vadd.f32 %v581_v35, %v534_v50 }
 0x378   :  { %v676_v52 = vpop.f32.mrf.mxu0 }
 0x379   :  { %v539_v53 = vadd.f32 %v535_v51, %v867_v5 }
 0x37b   :  { %541 = vst [vmem:[#allocation8 + $0x8] sm:$0xff] %v539_v53 }
 0x37c   :  { %800 = shalt.err (!%p797_p5)
}
 0x37d   :  { %553 = dma.vmem_to_hbm [thread:$0]  %s548_s2, 256, %s911_s3, [#allocation4], %s819_s22, %s819_s22, %s820_s23  }
 0x37e   :  { %813 = dma.done.wait [#allocation4], 256  }
 0x37f   :  { %814 = vsyncadd [#allocation4], 4294967040 }
 0x380   :  { %557 = vsyncpa [#allocation3], 1 }
 0x381   :  { %558 = vsyncpa [#allocation6], 1 }
 0x382   :  { %559 = vsyncpa [#allocation4], 1 }

</bundles_post_ra>
